<compile_context>
chip_gen: v7x
topology: tpu7x:2x2x1
jax: 0.10.0
libtpu: 0.0.40
codegen_flags: <defaults>
</compile_context>

<pallas_src>
import functools

import jax
import jax.numpy as jnp
from jax.experimental import pallas as pl
from jax.experimental.pallas import tpu as pltpu


def _dws_kernel(taps_ref, dwp_ref, pw_ref, b2_ref, o_ref, *,
                We, Cin, Wo, Cout, block_diag):
    # taps_ref: (th, 6*We*Cin)  flattened space-to-depth taps (one row tile)
    # dwp_ref : (10, Wo*Cin)    rows 0..8 = folded dw weights (kh*3+kw), row 9 = BN1 bias
    # pw_ref  : (Wo*Cin, Wo*Cout) block-diag folded 1x1 weight   (block_diag=True)
    #           (Cin, Cout)       plain folded 1x1 weight        (block_diag=False)
    # b2_ref  : (1, Wo*Cout)    folded BN2 bias (tiled over Wo)
    # o_ref   : (th, Wo*Cout)
    f32 = jnp.float32
    th = o_ref.shape[0]
    WeC = We * Cin
    WoC = Wo * Cin

    taps = taps_ref[...].astype(f32)          # (th, 6*We*Cin)
    dwp = dwp_ref[...]                        # (10, Wo*Cin), already f32

    def tap(split, off):
        start = split * WeC + off * Cin
        return taps[:, start:start + WoC]     # static lane slice, (th, Wo*Cin)

    # (kh, kw) -> (split, col offset). Splits: 0/1 = kh0 even/odd cols,
    # 2/3 = kh1 even/odd cols, 4/5 = kh2 even/odd cols.
    acc = tap(0, 0) * dwp[0:1]                # (0, 0)
    acc = acc + tap(1, 0) * dwp[1:2]          # (0, 1)
    acc = acc + tap(0, 1) * dwp[2:3]          # (0, 2)
    acc = acc + tap(2, 0) * dwp[3:4]          # (1, 0)
    acc = acc + tap(3, 0) * dwp[4:5]          # (1, 1)
    acc = acc + tap(2, 1) * dwp[5:6]          # (1, 2)
    acc = acc + tap(4, 0) * dwp[6:7]          # (2, 0)
    acc = acc + tap(5, 0) * dwp[7:8]          # (2, 1)
    acc = acc + tap(4, 1) * dwp[8:9]          # (2, 2)

    # BN1 bias (scale already folded into the weights) + ReLU
    h = jnp.maximum(acc + dwp[9:10], 0.0)     # (th, Wo*Cin)

    if block_diag:
        # 1x1 conv as one lane-dense MXU GEMM against kron(I_Wo, W_pw); no relayout.
        y = jnp.dot(h, pw_ref[...], preferred_element_type=f32)       # (th, Wo*Cout)
    else:
        # TODO(synk): for Cin >= 128 a channel-last layout (no relayout reshapes)
        # would be preferable; this path only triggers for large Wo*Cin.
        y = jnp.dot(h.reshape(th * Wo, Cin), pw_ref[...],
                    preferred_element_type=f32).reshape(th, Wo * Cout)

    y = jnp.maximum(y + b2_ref[...], 0.0)     # BN2 bias + ReLU
    o_ref[...] = y.astype(o_ref.dtype)


def _vmem_plan():
    """Generation-gated (vmem_limit_bytes, per-step block budget)."""
    try:
        cap = int(pltpu.get_tpu_info().vmem_capacity_bytes)
    except Exception:
        cap = None
    if cap is not None and cap >= 100 * 1024 * 1024:
        # v5e / v6e: 128 MiB physical VMEM -> larger tiles amortize step overhead.
        return 64 * 1024 * 1024, 8 * 1024 * 1024
    # v7x (64 MiB physical) or unknown: leave compiler headroom.
    return 40 * 1024 * 1024, 4 * 1024 * 1024


def _pick_row_tile(rows, lanes_in, lanes_out, step_budget):
    """Rows per grid step: multiple of 8, sized from (8,128)-padded VMEM bytes,
    with >= 2 parallel grid steps when possible (megacore / 2-TC balance)."""
    pad128 = lambda n: pl.cdiv(n, 128) * 128
    # f32 staging, x2 double-buffering, input block + output block per row.
    per_row = 2 * 4 * (pad128(lanes_in) + pad128(lanes_out))
    th_cap = max(8, (step_budget // per_row) // 8 * 8)
    n_steps = max(1, pl.cdiv(rows, th_cap))
    if rows >= 16:
        n_steps = max(n_steps, 2)
    th = pl.cdiv(pl.cdiv(rows, n_steps), 8) * 8
    return th, n_steps * th


def dws_conv(x_nchw, w_dw, g1, b1, m1, v1, w_pw, g2, b2, m2, v2, eps=1e-5):
    """Forward pass of DWSconv. x_nchw: (N, Cin, H, W). Returns (N, Cout, Ho, Wo)."""
    N, Cin, H, W = x_nchw.shape
    Cout = w_pw.shape[0]
    Ho = (H - 1) // 2 + 1          # k=3, stride=2, pad=1
    Wo = (W - 1) // 2 + 1
    We = Wo + 1
    dtype = x_nchw.dtype
    f32 = jnp.float32

    # ---- fold inference-mode BatchNorm into the conv weights ----------------
    s1 = g1 / jnp.sqrt(v1 + eps)
    s2 = g2 / jnp.sqrt(v2 + eps)
    wdw9 = (jnp.transpose(w_dw[:, 0, :, :], (1, 2, 0)).reshape(9, Cin)
            * s1[None, :]).astype(f32)                                 # (9, Cin)
    b1f = (b1 - m1 * s1).astype(f32)                                   # (Cin,)
    wpw = (jnp.transpose(w_pw[:, :, 0, 0], (1, 0)) * s2[None, :]).astype(f32)  # (Cin, Cout)
    b2f = (b2 - m2 * s2).astype(f32)                                   # (Cout,)

    # Lane-flattened parameters (lane index = w*Cin + c  /  w*Cout + co).
    dwp = jnp.concatenate([jnp.tile(wdw9, (1, Wo)),
                           jnp.tile(b1f[None, :], (1, Wo))], axis=0)   # (10, Wo*Cin)
    b2_flat = jnp.tile(b2f[None, :], (1, Wo))                          # (1, Wo*Cout)

    # 1x1 conv weight: block-diagonal kron(I_Wo, W_pw) keeps the GEMM lane-dense
    # with no in-kernel relayout, as long as it stays small.
    pad128 = lambda n: pl.cdiv(n, 128) * 128
    bd_bytes = pl.cdiv(Wo * Cin, 8) * 8 * pad128(Wo * Cout) * 4
    block_diag = bd_bytes <= 2 * 1024 * 1024
    pw_arg = jnp.kron(jnp.eye(Wo, dtype=f32), wpw) if block_diag else wpw

    # ---- space-to-depth (wrapper-side layout plumbing, plain XLA) -----------
    # NCHW -> NHWC, zero pad (conv padding=1), split rows/cols by parity so the
    # nine stride-2 taps become unit-stride lane slices of ONE stacked tensor.
    x = jnp.transpose(x_nchw, (0, 2, 3, 1))
    Hp, Wp = 2 * Ho + 1, 2 * We
    x_p = jnp.pad(x, ((0, 0), (1, Hp - H - 1), (1, Wp - W - 1), (0, 0)))
    ev, od = x_p[:, 0::2], x_p[:, 1::2]          # (N, Ho+1, Wp, C), (N, Ho, Wp, C)
    splits = [ev[:, :Ho, 0::2],      ev[:, :Ho, 1::2],        # kh = 0
              od[:, :, 0::2],        od[:, :, 1::2],          # kh = 1
              ev[:, 1:Ho + 1, 0::2], ev[:, 1:Ho + 1, 1::2]]   # kh = 2
    taps = jnp.stack(splits, axis=2).reshape(N * Ho, 6 * We * Cin)

    # ---- tiling / grid -------------------------------------------------------
    vmem_limit, step_budget = _vmem_plan()
    rows0 = N * Ho
    th, rows = _pick_row_tile(rows0, 6 * We * Cin, Wo * Cout, step_budget)
    if rows > rows0:
        taps = jnp.pad(taps, ((0, rows - rows0), (0, 0)))
    grid = (rows // th,)

    kernel = functools.partial(_dws_kernel, We=We, Cin=Cin, Wo=Wo, Cout=Cout,
                               block_diag=block_diag)

    out = pl.pallas_call(
        kernel,
        out_shape=jax.ShapeDtypeStruct((rows, Wo * Cout), dtype),
        grid=grid,
        in_specs=[
            pl.BlockSpec((th, 6 * We * Cin), lambda t: (t, 0)),
            pl.BlockSpec(dwp.shape, lambda t: (0, 0)),
            pl.BlockSpec(pw_arg.shape, lambda t: (0, 0)),
            pl.BlockSpec(b2_flat.shape, lambda t: (0, 0)),
        ],
        out_specs=pl.BlockSpec((th, Wo * Cout), lambda t: (t, 0)),
        compiler_params=pltpu.CompilerParams(
            dimension_semantics=("parallel",),
            vmem_limit_bytes=vmem_limit,
        ),
    )(taps, dwp, pw_arg, b2_flat)

    out = out[:rows0].reshape(N, Ho, Wo, Cout)    # drop padded rows, un-flatten
    return jnp.transpose(out, (0, 3, 1, 2))       # NHWC -> NCHW


def _reference(x, w_dw, g1, b1, m1, v1, w_pw, g2, b2, m2, v2, eps=1e-5):
    """Pure-JAX reference matching PyTorch (eval-mode BN) semantics, NCHW."""
    Cin = x.shape[1]
    y = jax.lax.conv_general_dilated(
        x, w_dw, window_strides=(2, 2), padding=((1, 1), (1, 1)),
        feature_group_count=Cin, dimension_numbers=("NCHW", "OIHW", "NCHW"))
    y = (y - m1.reshape(1, -1, 1, 1)) / jnp.sqrt(v1.reshape(1, -1, 1, 1) + eps)
    y = y * g1.reshape(1, -1, 1, 1) + b1.reshape(1, -1, 1, 1)
    y = jnp.maximum(y, 0.0)
    y = jax.lax.conv_general_dilated(
        y, w_pw, window_strides=(1, 1), padding="VALID",
        dimension_numbers=("NCHW", "OIHW", "NCHW"))
    y = (y - m2.reshape(1, -1, 1, 1)) / jnp.sqrt(v2.reshape(1, -1, 1, 1) + eps)
    y = y * g2.reshape(1, -1, 1, 1) + b2.reshape(1, -1, 1, 1)
    return jnp.maximum(y, 0.0)


if __name__ == "__main__":
    N, Cin, H, W, Cout = 2, 4, 16, 16, 8

    key = jax.random.PRNGKey(0)
    ks = jax.random.split(key, 11)

    x = jax.random.normal(ks[0], (N, Cin, H, W), jnp.float32)

    # Deterministic synthetic parameters (shapes follow nn.Conv2d / nn.BatchNorm2d)
    w_dw = jax.random.normal(ks[1], (Cin, 1, 3, 3), jnp.float32) * 0.5
    g1 = jax.random.uniform(ks[2], (Cin,), jnp.float32, 0.5, 1.5)
    b1 = jax.random.normal(ks[3], (Cin,), jnp.float32) * 0.1
    m1 = jax.random.normal(ks[4], (Cin,), jnp.float32) * 0.1
    v1 = jax.random.uniform(ks[5], (Cin,), jnp.float32, 0.5, 1.5)

    w_pw = jax.random.normal(ks[6], (Cout, Cin, 1, 1), jnp.float32) * 0.5
    g2 = jax.random.uniform(ks[7], (Cout,), jnp.float32, 0.5, 1.5)
    b2 = jax.random.normal(ks[8], (Cout,), jnp.float32) * 0.1
    m2 = jax.random.normal(ks[9], (Cout,), jnp.float32) * 0.1
    v2 = jax.random.uniform(ks[10], (Cout,), jnp.float32, 0.5, 1.5)

    out = jax.block_until_ready(
        dws_conv(x, w_dw, g1, b1, m1, v1, w_pw, g2, b2, m2, v2))
    ref = jax.block_until_ready(
        _reference(x, w_dw, g1, b1, m1, v1, w_pw, g2, b2, m2, v2))

    assert out.shape == (N, Cout, 8, 8), out.shape
    max_err = float(jnp.max(jnp.abs(out - ref)))
    assert max_err < 1e-4, f"max abs error {max_err}"
    print("KERNEL_OK")
</pallas_src>

<mosaic_0001>
module attributes {stable_mosaic.version = 11 : i64} {
  func.func @_dws_kernel(%arg0: i32, %arg1: memref<8x216xf32, #tpu.memory_space<vmem>>, %arg2: memref<10x32xf32, #tpu.memory_space<vmem>>, %arg3: memref<32x64xf32, #tpu.memory_space<vmem>>, %arg4: memref<1x64xf32, #tpu.memory_space<vmem>>, %arg5: memref<8x64xf32, #tpu.memory_space<vmem>>) attributes {dimension_semantics = [#tpu.dimension_semantics<parallel>], iteration_bounds = array<i64: 2>, scalar_prefetch = 0 : i64, scratch_operands = 0 : i64, tpu.core_type = #tpu.core_type<tc>, window_params = [{transform_indices = @transform_0, window_bounds = array<i64: 8, 216>}, {pipeline_mode = #tpu.pipeline_mode<synchronous>, transform_indices = @transform_1, window_bounds = array<i64: 10, 32>}, {pipeline_mode = #tpu.pipeline_mode<synchronous>, transform_indices = @transform_2, window_bounds = array<i64: 32, 64>}, {pipeline_mode = #tpu.pipeline_mode<synchronous>, transform_indices = @transform_3, window_bounds = array<i64: 1, 64>}, {transform_indices = @transform_4, window_bounds = array<i64: 8, 64>}]} {
    %c0 = arith.constant 0 : index
    %c0_0 = arith.constant 0 : index
    %0 = vector.load %arg1[%c0, %c0_0] : memref<8x216xf32, #tpu.memory_space<vmem>>, vector<8x216xf32>
    %c0_1 = arith.constant 0 : index
    %c0_2 = arith.constant 0 : index
    %1 = vector.load %arg2[%c0_1, %c0_2] : memref<10x32xf32, #tpu.memory_space<vmem>>, vector<10x32xf32>
    %2 = vector.extract_strided_slice %0 {offsets = [0, 0], sizes = [8, 32], strides = [1, 1]} : vector<8x216xf32> to vector<8x32xf32>
    %3 = vector.extract_strided_slice %1 {offsets = [0, 0], sizes = [1, 32], strides = [1, 1]} : vector<10x32xf32> to vector<1x32xf32>
    %4 = vector.broadcast %3 : vector<1x32xf32> to vector<8x32xf32>
    %5 = arith.mulf %2, %4 : vector<8x32xf32>
    %6 = vector.extract_strided_slice %0 {offsets = [0, 36], sizes = [8, 32], strides = [1, 1]} : vector<8x216xf32> to vector<8x32xf32>
    %7 = vector.extract_strided_slice %1 {offsets = [1, 0], sizes = [1, 32], strides = [1, 1]} : vector<10x32xf32> to vector<1x32xf32>
    %8 = vector.broadcast %7 : vector<1x32xf32> to vector<8x32xf32>
    %9 = arith.mulf %6, %8 : vector<8x32xf32>
    %10 = arith.addf %5, %9 : vector<8x32xf32>
    %11 = vector.extract_strided_slice %0 {offsets = [0, 4], sizes = [8, 32], strides = [1, 1]} : vector<8x216xf32> to vector<8x32xf32>
    %12 = vector.extract_strided_slice %1 {offsets = [2, 0], sizes = [1, 32], strides = [1, 1]} : vector<10x32xf32> to vector<1x32xf32>
    %13 = vector.broadcast %12 : vector<1x32xf32> to vector<8x32xf32>
    %14 = arith.mulf %11, %13 : vector<8x32xf32>
    %15 = arith.addf %10, %14 : vector<8x32xf32>
    %16 = vector.extract_strided_slice %0 {offsets = [0, 72], sizes = [8, 32], strides = [1, 1]} : vector<8x216xf32> to vector<8x32xf32>
    %17 = vector.extract_strided_slice %1 {offsets = [3, 0], sizes = [1, 32], strides = [1, 1]} : vector<10x32xf32> to vector<1x32xf32>
    %18 = vector.broadcast %17 : vector<1x32xf32> to vector<8x32xf32>
    %19 = arith.mulf %16, %18 : vector<8x32xf32>
    %20 = arith.addf %15, %19 : vector<8x32xf32>
    %21 = vector.extract_strided_slice %0 {offsets = [0, 108], sizes = [8, 32], strides = [1, 1]} : vector<8x216xf32> to vector<8x32xf32>
    %22 = vector.extract_strided_slice %1 {offsets = [4, 0], sizes = [1, 32], strides = [1, 1]} : vector<10x32xf32> to vector<1x32xf32>
    %23 = vector.broadcast %22 : vector<1x32xf32> to vector<8x32xf32>
    %24 = arith.mulf %21, %23 : vector<8x32xf32>
    %25 = arith.addf %20, %24 : vector<8x32xf32>
    %26 = vector.extract_strided_slice %0 {offsets = [0, 76], sizes = [8, 32], strides = [1, 1]} : vector<8x216xf32> to vector<8x32xf32>
    %27 = vector.extract_strided_slice %1 {offsets = [5, 0], sizes = [1, 32], strides = [1, 1]} : vector<10x32xf32> to vector<1x32xf32>
    %28 = vector.broadcast %27 : vector<1x32xf32> to vector<8x32xf32>
    %29 = arith.mulf %26, %28 : vector<8x32xf32>
    %30 = arith.addf %25, %29 : vector<8x32xf32>
    %31 = vector.extract_strided_slice %0 {offsets = [0, 144], sizes = [8, 32], strides = [1, 1]} : vector<8x216xf32> to vector<8x32xf32>
    %32 = vector.extract_strided_slice %1 {offsets = [6, 0], sizes = [1, 32], strides = [1, 1]} : vector<10x32xf32> to vector<1x32xf32>
    %33 = vector.broadcast %32 : vector<1x32xf32> to vector<8x32xf32>
    %34 = arith.mulf %31, %33 : vector<8x32xf32>
    %35 = arith.addf %30, %34 : vector<8x32xf32>
    %36 = vector.extract_strided_slice %0 {offsets = [0, 180], sizes = [8, 32], strides = [1, 1]} : vector<8x216xf32> to vector<8x32xf32>
    %37 = vector.extract_strided_slice %1 {offsets = [7, 0], sizes = [1, 32], strides = [1, 1]} : vector<10x32xf32> to vector<1x32xf32>
    %38 = vector.broadcast %37 : vector<1x32xf32> to vector<8x32xf32>
    %39 = arith.mulf %36, %38 : vector<8x32xf32>
    %40 = arith.addf %35, %39 : vector<8x32xf32>
    %41 = vector.extract_strided_slice %0 {offsets = [0, 148], sizes = [8, 32], strides = [1, 1]} : vector<8x216xf32> to vector<8x32xf32>
    %42 = vector.extract_strided_slice %1 {offsets = [8, 0], sizes = [1, 32], strides = [1, 1]} : vector<10x32xf32> to vector<1x32xf32>
    %43 = vector.broadcast %42 : vector<1x32xf32> to vector<8x32xf32>
    %44 = arith.mulf %41, %43 : vector<8x32xf32>
    %45 = arith.addf %40, %44 : vector<8x32xf32>
    %46 = vector.extract_strided_slice %1 {offsets = [9, 0], sizes = [1, 32], strides = [1, 1]} : vector<10x32xf32> to vector<1x32xf32>
    %47 = vector.broadcast %46 : vector<1x32xf32> to vector<8x32xf32>
    %48 = arith.addf %45, %47 : vector<8x32xf32>
    %cst = arith.constant 0.000000e+00 : f32
    %49 = vector.broadcast %cst : f32 to vector<8x32xf32>
    %50 = arith.maximumf %48, %49 : vector<8x32xf32>
    %c0_3 = arith.constant 0 : index
    %c0_4 = arith.constant 0 : index
    %51 = vector.load %arg3[%c0_3, %c0_4] : memref<32x64xf32, #tpu.memory_space<vmem>>, vector<32x64xf32>
    %cst_5 = arith.constant dense<0.000000e+00> : vector<8x64xf32>
    %52 = tpu.matmul %50, %51, %cst_5 {dimension_numbers = #tpu.dot_dimension_numbers<[1], [0], [0], [1], [0, 0, 1, 1], [], []>} : vector<8x32xf32>, vector<32x64xf32>, vector<8x64xf32> -> vector<8x64xf32>
    %c0_6 = arith.constant 0 : index
    %c0_7 = arith.constant 0 : index
    %53 = vector.load %arg4[%c0_6, %c0_7] : memref<1x64xf32, #tpu.memory_space<vmem>>, vector<1x64xf32>
    %54 = vector.broadcast %53 : vector<1x64xf32> to vector<8x64xf32>
    %55 = arith.addf %52, %54 : vector<8x64xf32>
    %cst_8 = arith.constant 0.000000e+00 : f32
    %56 = vector.broadcast %cst_8 : f32 to vector<8x64xf32>
    %57 = arith.maximumf %55, %56 : vector<8x64xf32>
    %c0_9 = arith.constant 0 : index
    %c0_10 = arith.constant 0 : index
    %58 = vector.load %arg5[%c0_9, %c0_10] : memref<8x64xf32, #tpu.memory_space<vmem>>, vector<8x64xf32>
    tpu.vector_store %arg5[%c0_9, %c0_10], %57 {strides = array<i32>} : memref<8x64xf32, #tpu.memory_space<vmem>>, vector<8x64xf32>,
    return
  }
  func.func @transform_0(%arg0: i32) -> (i32, i32) {
    %c0_i32 = arith.constant 0 : i32
    %c0_i32_0 = arith.constant 0 : i32
    return %arg0, %c0_i32 : i32, i32
  }
  func.func @transform_1(%arg0: i32) -> (i32, i32) {
    %c0_i32 = arith.constant 0 : i32
    %c0_i32_0 = arith.constant 0 : i32
    %c0_i32_1 = arith.constant 0 : i32
    return %c0_i32, %c0_i32_0 : i32, i32
  }
  func.func @transform_2(%arg0: i32) -> (i32, i32) {
    %c0_i32 = arith.constant 0 : i32
    %c0_i32_0 = arith.constant 0 : i32
    %c0_i32_1 = arith.constant 0 : i32
    return %c0_i32, %c0_i32_0 : i32, i32
  }
  func.func @transform_3(%arg0: i32) -> (i32, i32) {
    %c0_i32 = arith.constant 0 : i32
    %c0_i32_0 = arith.constant 0 : i32
    %c0_i32_1 = arith.constant 0 : i32
    return %c0_i32, %c0_i32_0 : i32, i32
  }
  func.func @transform_4(%arg0: i32) -> (i32, i32) {
    %c0_i32 = arith.constant 0 : i32
    %c0_i32_0 = arith.constant 0 : i32
    return %arg0, %c0_i32 : i32, i32
  }
}

</mosaic_0001>

<bundles_post_ra>
// kernel: tpu_custom_call.1
= control target key start
LH: loop header
LB: loop body
LE: loop exit
PB: predicated region body
PF: predicated region fallthrough
CT: control target
= control target key end

     0   :  { %9 = vsyncpa [#allocation3], 0  ;;  %s1161_s0 = inlined_call_operand.hbm [shape: f32[16,216], index: 0, kind: input, shape index: {}]   ;;  %s1162_s1 = inlined_call_operand.hbm [shape: f32[10,32], index: 1, kind: input, shape index: {}]   ;;  %s1163_s2 = inlined_call_operand.hbm [shape: f32[32,64], index: 2, kind: input, shape index: {}]   ;;  %s1164_s3 = inlined_call_operand.vmem [shape: f32[1,64], index: 3, kind: input, shape index: {}]   ;;  %s1165_s4 = inlined_call_operand.hbm [shape: f32[16,64], index: 4, kind: output, shape index: {}]  }
   0x1   :  { %11 = vsyncpa [#allocation3 + $0x1], 0 }
   0x2   :  { %12 = vsyncpa [#allocation6], 0 }
   0x3   :  { %13 = vsyncpa [#allocation4], 0 }
   0x4   :  { %15 = vsyncpa [#allocation4 + $0x1], 0  ;;  %s897_s15 = smov 0   ;;  %s899_s16 = smov 0  }
   0x5   :  { %s901_s17 = smov 0   ;;  %s903_s18 = smov 0  }
   0x6 LB: > { %s918_s19 = sadd.s32 4294967295, %s849_s18   ;;  %s567_s20 = sadd.s32 4294967294, %s849_s18   ;;  %s849_s18 = sphi %s903_s18, %s1185_s18   ;;  %s845_s17 = sphi %s901_s17, %s1184_s17   ;;  %s841_s16 = sphi %s899_s16, %s1183_s16   ;;  %s837_s15 = sphi %s897_s15, %s1182_s15  }
   0x7   : > { %p41_p0 = scmp.ne.s32.totalorder %s841_s16, %s837_s15  ;;  %p1166_p1 = scmp.eq.s32.totalorder %s918_s19, 0 }
   0x8   : > { %p134_p3 = scmp.eq.s32.totalorder %s567_s20, 1  ;;  %p568_p5 = scmp.ge.s32.totalorder %s849_s18, 1 }
   0x9   : > { %p927_p4 = por %p1166_p1, %p41_p0  ;;  %p141_p7 = scmp.lt.s32.totalorder %s849_s18, 3 }
   0xa   : > { %p932_p6 = por %p134_p3, %p41_p0  ;;  %s851_s24 = smov [#allocation5]  }
   0xb   : > { %s1169_s21 = scalar_select %p927_p4, 1, 0 }
   0xc   : > { %s1170_s22 = scalar_select %p932_p6, 1, 0 }
   0xd   : > { %p937_p8 = pnand %p568_p5, %p141_p7  ;;  %s153_s25 = sshll.u32 %s851_s24, 4  ;;  %s941_s25 = int_to_ptr.vmem [resolvable:$true] %s153_s25 }
   0xe   : > { %s852_s27 = smov [#allocation7]   ;;  %s693_s5 = scalar_lea.hbm %s1162_s1, 256 }
   0xf   : > { %p621_p9 = pneg %p937_p8  ;;  %s166_s28 = sshll.u32 %s852_s27, 4  ;;  %s952_s28 = int_to_ptr.vmem [resolvable:$true] %s166_s28 }
  0x10   : > { %p694_p12 = scmp.ne.s32.totalorder %s1162_s1, %s693_s5  ;;  %p700_p5 = scmp.lt.u32.totalorder %s693_s5, %s1162_s1 }
  0x11   : > { %p948_p11 = pnand %p621_p9, %p1166_p1 }
  0x13   : > { %p695_p13 = pneg %p948_p11 }
  0x15   : > { %p696_p0 = pnand %p695_p13, %p694_p12 }
  0x17   : > { %p697_p3 = pneg %p696_p0 }
  0x19   : > { %p702_p7 = pnand %p700_p5, %p697_p3 }
  0x1b   : > { %705 = shalt.err (!%p702_p7)
}
  0x1c   : > { %s706_s10 = scalar_lea.vmem %s941_s25, 256  ;;  %p714_p2 = scmp.lt.s32.totalorder %s941_s25, %s941_s25 }
  0x1d   : > { %p707_p9 = scmp.ne.s32.totalorder %s941_s25, %s706_s10  ;;  %p715_p12 = scmp.lt.s32.totalorder %s706_s10, %s706_s10 }
  0x1f   : > { %p709_p10 = pnand %p707_p9, %p695_p13  ;;  %p716_p0 = por %p715_p12, %p714_p2 }
  0x21   : > { %p710_p1 = pneg %p709_p10 }
  0x23   : > { %p717_p6 = pnand %p716_p0, %p710_p1 }
  0x25   : > { %720 = shalt.err (!%p717_p6)
}
  0x26   : > { %s853_s11 = smov 128   ;;  %s854_s12 = smov 8  }
  0x27   : > { %624 = dma.hbm_to_vmem [thread:$0]  (!%p948_p11), %s1162_s1, 256, %s941_s25, [#allocation6], %s853_s11, %s853_s11, %s854_s12  }
  0x28   : > { %s721_s27 = scalar_lea.hbm %s1163_s2, 512 }
  0x29   : > { %p722_p2 = scmp.ne.s32.totalorder %s1163_s2, %s721_s27  ;;  %p728_p10 = scmp.lt.u32.totalorder %s721_s27, %s1163_s2 }
  0x2b   : > { %p724_p1 = pnand %p722_p2, %p695_p13 }
  0x2d   : > { %p725_p6 = pneg %p724_p1 }
  0x2f   : > { %p730_p3 = pnand %p728_p10, %p725_p6 }
  0x31   : > { %733 = shalt.err (!%p730_p3)
}
  0x32   : > { %s734_s25 = scalar_lea.vmem %s952_s28, 512  ;;  %p742_p12 = scmp.lt.s32.totalorder %s952_s28, %s952_s28 }
  0x33   : > { %p735_p5 = scmp.ne.s32.totalorder %s952_s28, %s734_s25  ;;  %p743_p0 = scmp.lt.s32.totalorder %s734_s25, %s734_s25 }
  0x35   : > { %p737_p7 = pnand %p735_p5, %p695_p13  ;;  %p744_p2 = por %p743_p0, %p742_p12 }
  0x37   : > { %p738_p9 = pneg %p737_p7 }
  0x39   : > { %p745_p1 = pnand %p744_p2, %p738_p9 }
  0x3b   : > { %748 = shalt.err (!%p745_p1)
}
  0x3c   : > { %627 = dma.hbm_to_vmem [thread:$0]  (!%p948_p11), %s1163_s2, 512, %s952_s28, [#allocation6], %s853_s11, %s853_s11, %s854_s12  }
  0x3d   : > { %s1007_s9 = sadd.s32 1, %s849_s18   ;;  %s28_s26 = sadd.s32 1, %s845_s17 }
  0x3e   : > { %s25_s10 = ssub.s32 %s849_s18, %s1007_s9  ;;  %p35_p13 = scmp.ne.s32.totalorder %s845_s17, %s841_s16 }
  0x3f   : > { %p26_p6 = scmp.eq.s32.totalorder %s25_s10, 0  ;;  %p36_p10 = scmp.eq.s32.totalorder %s849_s18, 0 }
  0x40   : > { %p1173_p3 = scmp.eq.s32.totalorder %s918_s19, 1  ;;  %p638_p7 = scmp.lt.s32.totalorder %s849_s18, 2 }
  0x41   : > { %s1023_s14 = scalar_select %p26_p6, %s845_s17, %s28_s26  }
  0x42   : > { %p1017_p5 = por %p1173_p3, %p35_p13  ;;  %p37_p9 = por %p36_p10, %p35_p13 }
  0x43   : > { %s183_s20 = sand.u32 1, %s845_s17   ;;  %s586_s28 = sshll.u32 %s849_s18, 8 }
  0x44   : > { %s1174_s13 = scalar_select %p1017_p5, 1, 0 }
  0x45   : > { %s572_s24 = sshll.u32 %s183_s20, 4  ;;  %s1030_s27 = scalar_lea.hbm %s1161_s0, %s586_s28 }
  0x46   : > { %s187_s29 = scalar_lea.vmem [#allocation2], %s572_s24  ;;  %p1034_p11 = pnand %p638_p7, %p37_p9 }
  0x47   : > { %s195_s30 = sshll.u32 %s187_s29, 4  ;;  %s184_s6 = scalar_lea.sflag [#allocation3], %s183_s20  ;;  %s1032_s30 = int_to_ptr.vmem [resolvable:$true] %s195_s30 }
  0x48   : > { %s749_s25 = scalar_lea.hbm %s1030_s27, 256  ;;  %p751_p0 = pneg %p1034_p11 }
  0x49   : > { %p750_p12 = scmp.ne.s32.totalorder %s1030_s27, %s749_s25  ;;  %s754_s26 = scalar_lea.hbm %s1161_s0, 512 }
  0x4a   : > { %p755_p13 = scmp.lt.u32.totalorder %s1030_s27, %s1161_s0  ;;  %p756_p6 = scmp.lt.u32.totalorder %s754_s26, %s749_s25 }
  0x4b   : > { %p752_p2 = pnand %p751_p0, %p750_p12  ;;  %p758_p3 = scmp.lt.u32.totalorder %s749_s25, %s1030_s27 }
  0x4c   : > { %p757_p10 = por %p756_p6, %p755_p13 }
  0x4d   : > { %p753_p1 = pneg %p752_p2 }
  0x4e   : > { %p759_p7 = por %p758_p3, %p757_p10 }
  0x50   : > { %p760_p9 = pnand %p759_p7, %p753_p1 }
  0x52   : > { %763 = shalt.err (!%p760_p9)
}
  0x53   : > { %s764_s20 = scalar_lea.vmem %s1032_s30, 256  ;;  %s855_s28 = smov [#allocation2]  }
  0x54   : > { %p765_p12 = scmp.ne.s32.totalorder %s1032_s30, %s764_s20  ;;  %s769_s11 = sshll.u32 %s855_s28, 4  ;;  %s770_s11 = int_to_ptr.vmem [resolvable:$false] %s769_s11 }
  0x55   : > { %s771_s12 = scalar_lea.vmem %s770_s11, 512  ;;  %p772_p4 = scmp.lt.s32.totalorder %s1032_s30, %s770_s11 }
  0x56   : > { %p767_p2 = pnand %p765_p12, %p751_p0  ;;  %p773_p13 = scmp.lt.s32.totalorder %s771_s12, %s764_s20 }
  0x58   : > { %p768_p5 = pneg %p767_p2  ;;  %p774_p6 = por %p773_p13, %p772_p4 }
  0x5a   : > { %p775_p10 = pnand %p774_p6, %p768_p5 }
  0x5c   : > { %778 = shalt.err (!%p775_p10)
}
  0x5d   : > { %631 = dma.hbm_to_vmem [thread:$0]  (!%p1034_p11), %s1030_s27, 256, %s1032_s30, %s184_s6  }
  0x5e   : > { %204 = sbr.rel (%p937_p8) target bundleno = 599 (0x257), region = 36  ;;  %s1066_s29 = sand.u32 (!%p937_p8), 1, %s841_s16  }
  0x5f   : > { %s576_s25 = sshll.u32 (!%p937_p8), %s1066_s29, 4  ;;  %s207_s7 = scalar_lea.sflag (!%p937_p8), [#allocation3], %s1066_s29 }
  0x60   : > { %s1070_s8 = scalar_lea.vmem (!%p937_p8), [#allocation2], %s576_s25  ;;  %p1176_p4 = scmp.ne.s32.totalorder (!%p937_p8), %s1169_s21, 0 }
  0x65   : > { %824 = dma.done.wait (%p1176_p4), %s207_s7, 256  }
  0x66   : > { %826 = vsyncadd (%p1176_p4), %s207_s7, 4294967040  ;;  %p1177_p5 = scmp.eq.s32.totalorder %s918_s19, 0 }
  0x68   : > { %828 = dma.done.wait (%p1177_p5), [#allocation6], 768   ;;  %p1178_p8 = pmov %p1177_p5 }
  0x69   : > { %v247_v0 = vlaneseq  ;;  %v245_v6 = vld [vmem:[#allocation5] sm:$0xff]  ;;  %s856_s21 = smov 36   ;;  %s857_s23 = smov 72   ;;  %v1093_v17 = vld [vmem:[#allocation5 + $0x8] sm:$0x3]  ;;  %v376_v30 = vld [vmem:[#allocation7] sm:$0xff] }
  0x6a   : > { %830 = vsyncadd (%p1178_p8), [#allocation6], 4294966528  ;;  %s858_s27 = smov 4   ;;  %s859_s30 = smov 108   ;;  %v243_v21 = vld [vmem:[%s1070_s8] sm:$0xff]  ;;  %v244_v29 = vld [vmem:[%s1070_s8 + $0x8] sm:$0xff] }
  0x6b   : > { %v1080_v1 = vshrl.u32 %v247_v0, 7  ;;  %s860_s5 = smov 76   ;;  %s861_s6 = smov 16   ;;  %v377_v31 = vld [vmem:[#allocation7 + $0x8] sm:$0xff]  ;;  %v865_v33 = vmov 0.0|0.0   ;;  %v378_v39 = vld [vmem:[#allocation7 + $0x10] sm:$0xff] }
  0x6c   : > { %s862_s26 = smov 52   ;;  %s863_s10 = smov 20   ;;  %603 = vmatprep.subr.bf16.mxu0 %v865_v33  ;;  %v604_v34 = vpack.c.bf16 %v377_v31, %v376_v30  ;;  %v379_v40 = vld [vmem:[#allocation7 + $0x18] sm:$0xff]  ;;  %vm868_vm0 = vmmov 0   ;;  %v869_v46 = vmov 0.0   ;;  %vm310_vm1 = vcmask 162816  }
  0x6d   : > { %v254_v2 = vsub.s32 1, %v1080_v1  ;;  %v282_v3 = vsub.s32 3, %v1080_v1  ;;  %v268_v4 = vsub.s32 2, %v1080_v1  ;;  %v296_v5 = vsub.s32 4, %v1080_v1  ;;  %s864_s24 = smov 92   ;;  %s866_s20 = smov 124   ;;  %600 = vmatprep.mubr.msk.f32.mxu0 %vm868_vm0, %v869_v46 }
  0x6e   : > { %v316_v11 = vsub.s32 5, %v1080_v1  ;;  %v330_v12 = vsub.s32 6, %v1080_v1  ;;  %v249_v13 = vsub.s32 0, %v1080_v1  ;;  %v344_v16 = vsub.s32 7, %v1080_v1  ;;  %s867_s28 = smov 56   ;;  %605 = vmatpush3.bf16.msra.mxu0 %v604_v34  ;;  %s870_s11 = smov 112  }
  0x6f   : > { %v255_v7 = vrot.slane %v245_v6, %v254_v2  ;;  %v283_v8 = vrot.slane %v245_v6, %v282_v3  ;;  %v269_v9 = vrot.slane %v245_v6, %v268_v4  ;;  %v297_v10 = vrot.slane %v245_v6, %v296_v5  ;;  %606 = vmatprep.subr.bf16.mxu0 %v865_v33  ;;  %s579_s12 = sshll.u32 %s1066_s29, 3  ;;  %s583_s8 = sshll.u32 %s918_s19, 7 }
  0x70   : > { %v317_v14 = vrot.slane %v245_v6, %v316_v11  ;;  %v331_v15 = vrot.slane %v245_v6, %v330_v12  ;;  %v250_v18 = vrot.slane %v245_v6, %v249_v13  ;;  %v345_v19 = vrot.slane %v245_v6, %v344_v16  ;;  %p1179_p0 = scmp.ne.s32.totalorder %s1174_s13, 0  ;;  %s871_s19 = smov [#allocation8]  }
  0x71   : > { %257 = vrot.lane.b32.xlu0 %v255_v7, %s856_s21  ;;  %285 = vrot.lane.b32.xlu1 %v283_v8, %s857_s23  ;;  %v359_v20 = vrot.slane %v1093_v17, %v249_v13  ;;  %v607_v41 = vpack.c.bf16 %v379_v40, %v378_v39  ;;  %v373_v4 = vrot.slane %v1093_v17, %v254_v2  ;;  %vm387_vm2 = vcmask 261120   ;;  %v580_v8 = vld [vmem:[%s1164_s3] ss:$0 sm:$0xff]  ;;  %s242_s21 = scalar_lea.vmem [#allocation8], %s579_s12 }
  0x72   : > { %v251_v22 = vmul.f32 %v250_v18, %v243_v21  ;;  %s478_s23 = sshll.u32 %s242_s21, 4  ;;  %vm462_vm3 = vcmask 523264   ;;  %s1119_s23 = int_to_ptr.vmem [resolvable:$true] %s478_s23 }
  0x73   : > { %608 = vmatpush3.bf16.msra.mxu0 %v607_v41 }
  0x75   : > { %271 = vrot.lane.b32.xlu0 %v269_v9, %s858_s27  ;;  %299 = vrot.lane.b32.xlu1 %v297_v10, %s859_s30 }
  0x79   : > { %319 = vrot.lane.b32.xlu0 %v317_v14, %s860_s5  ;;  %333 = vrot.lane.b32.xlu1 %v331_v15, %s861_s6  ;;  %s465_s6 = scalar_lea.sflag [#allocation4], %s1066_s29 }
  0x7d   : > { %347 = vrot.lane.b32.xlu0 %v345_v19, %s862_s26  ;;  %361 = vrot.lane.b32.xlu1 %v359_v20, %s863_s10 }
  0xe3   : > { %v258_v23 = vpop.permute.xlu0 %257  ;;  %v286_v24 = vpop.permute.xlu1 %285 }
  0xe4   : > { %v260_v25 = vmul.f32 %v258_v23, %v243_v21  ;;  %v288_v26 = vmul.f32 %v286_v24, %v243_v21 }
  0xe6   : > { %262 = vrot.lane.b32.xlu0 %v260_v25, %s864_s24 }
  0xe7   : > { %v272_v27 = vpop.permute.xlu0 %271  ;;  %v300_v28 = vpop.permute.xlu1 %299 }
  0xe8   : > { %v274_v32 = vmul.f32 %v272_v27, %v243_v21  ;;  %v302_v35 = vmul.f32 %v300_v28, %v243_v21  ;;  %v303_v36 = vmul.f32 %v300_v28, %v244_v29 }
  0xea   : > { %276 = vrot.lane.b32.xlu1 %v274_v32, %s866_s20  ;;  %290 = vrot.lane.b32.xlu0 %v288_v26, %s867_s28 }
  0xeb   : > { %v320_v37 = vpop.permute.xlu0 %319  ;;  %v334_v38 = vpop.permute.xlu1 %333 }
  0xec   : > { %v322_v42 = vmul.f32 %v320_v37, %v243_v21  ;;  %v336_v43 = vmul.f32 %v334_v38, %v244_v29 }
  0xee   : > { %306 = vrot.lane.b32.xlu1 %v302_v35, %s863_s10  ;;  %308 = vrot.lane.b32.xlu0 %v303_v36, %s863_s10  ;;  %s783_s10 = sshll.u32 %s871_s19, 4  ;;  %s784_s10 = int_to_ptr.vmem [resolvable:$false] %s783_s10 }
  0xef   : > { %v348_v44 = vpop.permute.xlu0 %347  ;;  %v362_v45 = vpop.permute.xlu1 %361  ;;  %s785_s24 = scalar_lea.vmem %s784_s10, 256  ;;  %p786_p7 = scmp.lt.s32.totalorder %s1119_s23, %s784_s10 }
  0xf0   : > { %v350_v47 = vmul.f32 %v348_v44, %v244_v29  ;;  %v364_v48 = vmul.f32 %v362_v45, %v244_v29 }
  0xf2   : > { %324 = vrot.lane.b32.xlu1 %v322_v42, %s862_s26  ;;  %338 = vrot.lane.b32.xlu0 %v336_v43, %s870_s11  ;;  %s779_s26 = scalar_lea.vmem %s1119_s23, 128 }
  0xf3   : > { %p780_p11 = scmp.ne.s32.totalorder %s1119_s23, %s779_s26  ;;  %p787_p9 = scmp.lt.s32.totalorder %s785_s24, %s779_s26 }
  0xf5   : > { %p781_p1 = pnand %p780_p11, %p1179_p0  ;;  %p788_p12 = por %p787_p9, %p786_p7 }
  0xf6   : > { %352 = vrot.lane.b32.xlu1 %v350_v47, %s860_s5  ;;  %366 = vrot.lane.b32.xlu0 %v364_v48, %s859_s30  ;;  %s1117_s5 = scalar_lea.hbm %s1165_s4, %s583_s8 }
  0xf7   : > { %p782_p3 = pneg %p781_p1 }
  0xf9   : > { %p789_p2 = pnand %p788_p12, %p782_p3 }
 0x158   : > { %v263_v49 = vpop.permute.xlu0 %262 }
 0x159   : > { %v265_v50 = vadd.f32 %v263_v49, %v251_v22 }
 0x15c   : > { %v277_v51 = vpop.permute.xlu1 %276  ;;  %v291_v52 = vpop.permute.xlu0 %290 }
 0x15d   : > { %v279_v53 = vadd.f32 %v277_v51, %v265_v50 }
 0x15f   : > { %v293_v54 = vadd.f32 %v291_v52, %v279_v53 }
 0x160   : > { %v307_v55 = vpop.permute.xlu1 %306  ;;  %v309_v56 = vpop.permute.xlu0 %308 }
 0x161   : > { %v311_v57 = vsel %vm310_vm1, %v307_v55, %v309_v56 }
 0x162   : > { %v313_v58 = vadd.f32 %v311_v57, %v293_v54 }
 0x164   : > { %v325_v59 = vpop.permute.xlu1 %324  ;;  %v339_v60 = vpop.permute.xlu0 %338 }
 0x165   : > { %v327_v61 = vadd.f32 %v325_v59, %v313_v58 }
 0x167   : > { %v341_v62 = vadd.f32 %v339_v60, %v327_v61 }
 0x168   : > { %v353_v63 = vpop.permute.xlu1 %352  ;;  %v367_v0 = vpop.permute.xlu0 %366 }
 0x169   : > { %v355_v3 = vadd.f32 %v353_v63, %v341_v62 }
 0x16b   : > { %v369_v5 = vadd.f32 %v367_v0, %v355_v3 }
 0x16d   : > { %v374_v6 = vadd.f32 %v373_v4, %v369_v5 }
 0x16f   : > { %v375_v7 = vmax.f32 %v374_v6, 0.0 }
 0x171   : > { %601 = vmatmul.mubr.msk.f32.vlgmr.msra.gmra.mrb[0].mxu0 %vm387_vm2, %v375_v7 }
 0x244   : > { %v457_v9 = vpop.f32.mrb[0].mxu0 }
 0x245   : > { %v458_v10 = vadd.f32 %v580_v8, %v457_v9  ;;  %v602_v1 = vpop.f32.mrb[1].mxu0 }
 0x247   : > { %v461_v2 = vmax.f32 %v458_v10, 0.0 }
 0x249   : > { %463 = vst.msk [vmem:[%s242_s21] sm:$0xff] %vm462_vm3, %v461_v2 }
 0x24a   : > { %792 = shalt.err (!%p789_p2)
}
 0x24b   : > { %s793_s29 = scalar_lea.hbm %s1117_s5, 128  ;;  %s797_s11 = scalar_lea.hbm %s1165_s4, 256 }
 0x24c   : > { %p794_p13 = scmp.ne.s32.totalorder %s1117_s5, %s793_s29  ;;  %p798_p4 = scmp.lt.u32.totalorder %s1117_s5, %s1165_s4 }
 0x24d   : > { %p799_p5 = scmp.lt.u32.totalorder %s797_s11, %s793_s29  ;;  %p801_p11 = scmp.lt.u32.totalorder %s793_s29, %s1117_s5 }
 0x24e   : > { %p795_p6 = pnand %p794_p13, %p1179_p0 }
 0x24f   : > { %p800_p8 = por %p799_p5, %p798_p4 }
 0x250   : > { %p796_p10 = pneg %p795_p6 }
 0x251   : > { %p802_p1 = por %p801_p11, %p800_p8 }
 0x253   : > { %p803_p3 = pnand %p802_p1, %p796_p10 }
 0x255   : > { %806 = shalt.err (!%p803_p3)
}
 0x256   : > { %619 = dma.vmem_to_hbm [thread:$0]  (%p1179_p0), %s1119_s23, 128, %s1117_s5, %s465_s6  }
 0x257 PF: > { %s490_s7 = sand.u32 1, %s837_s15   ;;  %p1180_p7 = scmp.ne.s32.totalorder %s1170_s22, 0 }
 0x258   : > { %p1181_p9 = scmp.ge.s32.totalorder %s849_s18, 2  ;;  %s491_s8 = scalar_lea.sflag [#allocation4], %s490_s7 }
 0x25a   : > { %p633_p12 = pnand %p1181_p9, %p1180_p7 }
 0x25c   : > { %832 = dma.done.wait (!%p633_p12), %s491_s8, 128  }
 0x25d   : > { %834 = vsyncadd (!%p633_p12), %s491_s8, 4294967168  ;;  %p18_p2 = scmp.ge.s32.totalorder %s1007_s9, 4   ;;  %s1182_s15 = smov %s841_s16 }
 0x25e   : > { %s1183_s16 = smov %s845_s17  ;;  %s1184_s17 = smov %s1023_s14 }
 0x25f   : > { %s1185_s18 = smov %s1007_s9  ;;  %20 = sbr.rel (!%p18_p2) target bundleno = 6 (0x6), region = 89 }
 0x266   :  { %496 = vsyncpa [#allocation3], 1 }
 0x267   :  { %498 = vsyncpa [#allocation3 + $0x1], 1 }
 0x268   :  { %499 = vsyncpa [#allocation6], 1 }
 0x269   :  { %500 = vsyncpa [#allocation4], 1 }
 0x26a   :  { %502 = vsyncpa [#allocation4 + $0x1], 1 }

</bundles_post_ra>
